<compile_context>
chip_gen: v5e
topology: v5e:2x2
jax: 0.10.0
libtpu: 0.0.40
codegen_flags: <defaults>
</compile_context>

<pallas_src>
import math
from functools import partial

import jax
import jax.numpy as jnp
from jax.experimental import pallas as pl
from jax.experimental.pallas import tpu as pltpu

LN_EPS = 1e-5
NEG_INF = -1e30  # large finite negative (avoids -inf -> NaN risk)


def _vmem_limit_bytes(estimate):
    """Explicit scoped-VMEM budget, capped to ~75% of physical VMEM."""
    cap = 128 * 1024 * 1024
    try:
        info = pltpu.get_tpu_info()
        cap = int(getattr(info, "vmem_capacity_bytes", cap))
    except Exception:
        pass
    return int(min(max(estimate, 16 * 1024 * 1024), int(cap * 0.75)))


# ----------------------------------------------------------------------------
# Kernels
# ----------------------------------------------------------------------------

def _addpos_kernel(x_ref, pos_ref, o_ref):
    # x_ref: (1, S, D) bf16 gathered token embeddings; pos_ref: (S, D) bf16.
    o_ref[0] = x_ref[0].astype(jnp.float32) + pos_ref[...].astype(jnp.float32)


def _block_kernel(x_ref, ln1g_ref, ln1b_ref, wqkv_ref, bqkv_ref, wo_ref, bo_ref,
                  ln2g_ref, ln2b_ref, w1_ref, b1_ref, w2_ref, b2_ref, o_ref,
                  *, heads, scale):
    # Fully fused residual block for one batch element:
    #   x1 = x + out_proj( MHA( ln1(x) ) )
    #   y  = x1 + fc2( gelu( fc1( ln2(x1) ) ) )
    x = x_ref[0]                                   # [S, D] f32
    seq, d = x.shape
    hd = d // heads

    # ---- ln1 ----
    mu = jnp.mean(x, axis=-1, keepdims=True)
    var = jnp.mean(jnp.square(x - mu), axis=-1, keepdims=True)
    hn = ((x - mu) * jax.lax.rsqrt(var + LN_EPS) * ln1g_ref[...]
          + ln1b_ref[...]).astype(jnp.bfloat16)

    # ---- full-width QKV projection (lane-dense, N = 3D) ----
    qkv = jnp.dot(hn, wqkv_ref[...],
                  preferred_element_type=jnp.float32) + bqkv_ref[...]   # [S, 3D] f32

    # in-kernel causal mask (no [S,S] mask DMA)
    row = jax.lax.broadcasted_iota(jnp.int32, (seq, seq), 0)
    col = jax.lax.broadcasted_iota(jnp.int32, (seq, seq), 1)
    causal = col <= row

    head_outs = []
    for h in range(heads):                          # static loop; static slices
        q = qkv[:, h * hd:(h + 1) * hd] * scale     # fold 1/sqrt(hd) into q
        k = qkv[:, d + h * hd:d + (h + 1) * hd]
        v = qkv[:, 2 * d + h * hd:2 * d + (h + 1) * hd]
        s = jax.lax.dot_general(q.astype(jnp.bfloat16), k.astype(jnp.bfloat16),
                                (((1,), (1,)), ((), ())),
                                preferred_element_type=jnp.float32)     # [S, S]
        s = jnp.where(causal, s, NEG_INF)
        m = jnp.max(s, axis=-1, keepdims=True)
        p = jnp.exp(s - m)
        p = p * pl.reciprocal(jnp.sum(p, axis=-1, keepdims=True), approx=True)
        head_outs.append(jnp.dot(p.astype(jnp.bfloat16), v.astype(jnp.bfloat16),
                                 preferred_element_type=jnp.float32))   # [S, hd]
    attn = jnp.concatenate(head_outs, axis=-1)                          # [S, D]

    # ---- out-proj (N = D) + residual ----
    x1 = x + jnp.dot(attn.astype(jnp.bfloat16), wo_ref[...],
                     preferred_element_type=jnp.float32) + bo_ref[...]

    # ---- ln2 + MLP + residual ----
    mu2 = jnp.mean(x1, axis=-1, keepdims=True)
    var2 = jnp.mean(jnp.square(x1 - mu2), axis=-1, keepdims=True)
    hn2 = ((x1 - mu2) * jax.lax.rsqrt(var2 + LN_EPS) * ln2g_ref[...]
           + ln2b_ref[...]).astype(jnp.bfloat16)
    h1 = jnp.dot(hn2, w1_ref[...], preferred_element_type=jnp.float32) + b1_ref[...]
    h1 = 0.5 * h1 * (1.0 + jax.lax.erf(h1 * (1.0 / math.sqrt(2.0))))    # exact GELU
    o_ref[0] = x1 + jnp.dot(h1.astype(jnp.bfloat16), w2_ref[...],
                            preferred_element_type=jnp.float32) + b2_ref[...]


def _layernorm_kernel(x_ref, g_ref, b_ref, o_ref):
    x = x_ref[0]
    mu = jnp.mean(x, axis=-1, keepdims=True)
    var = jnp.mean(jnp.square(x - mu), axis=-1, keepdims=True)
    o_ref[0] = (x - mu) * jax.lax.rsqrt(var + LN_EPS) * g_ref[...] + b_ref[...]


# ----------------------------------------------------------------------------
# pallas_call wrappers
# ----------------------------------------------------------------------------

def pallas_add_pos(emb, pos):
    b, s, d = emb.shape
    return pl.pallas_call(
        _addpos_kernel,
        out_shape=jax.ShapeDtypeStruct((b, s, d), jnp.float32),
        grid=(b,),
        in_specs=[pl.BlockSpec((1, s, d), lambda i: (i, 0, 0)),
                  pl.BlockSpec((s, d), lambda i: (0, 0))],
        out_specs=pl.BlockSpec((1, s, d), lambda i: (i, 0, 0)),
        compiler_params=pltpu.CompilerParams(dimension_semantics=("parallel",)),
    )(emb, pos)


def pallas_transformer_block(x, p, *, heads):
    b, s, d = x.shape
    d_mlp = p['w_fc1'].shape[1]
    hd = d // heads
    scale = 1.0 / math.sqrt(hd)

    # Rough VMEM estimate: bf16 weights (double-buffered by the pipeline even
    # though constant-index -> revisited, not re-DMA'd) + f32 activations /
    # intermediates, with headroom.
    w_bytes = 2 * (d * 3 * d + d * d + d * d_mlp + d_mlp * d)
    act_bytes = 4 * s * (4 * d + 3 * d + d_mlp + s)
    vmem_limit = _vmem_limit_bytes(2 * (w_bytes + act_bytes))

    x_spec = pl.BlockSpec((1, s, d), lambda i: (i, 0, 0))

    def full_spec(shape):
        return pl.BlockSpec(shape, lambda i, _s=shape: tuple(0 for _ in _s))

    return pl.pallas_call(
        partial(_block_kernel, heads=heads, scale=scale),
        out_shape=jax.ShapeDtypeStruct((b, s, d), jnp.float32),
        grid=(b,),
        in_specs=[x_spec,
                  full_spec((1, d)), full_spec((1, d)),          # ln1 g/b
                  full_spec((d, 3 * d)), full_spec((1, 3 * d)),  # Wqkv / bqkv
                  full_spec((d, d)), full_spec((1, d)),          # Wout / bout
                  full_spec((1, d)), full_spec((1, d)),          # ln2 g/b
                  full_spec((d, d_mlp)), full_spec((1, d_mlp)),  # fc1
                  full_spec((d_mlp, d)), full_spec((1, d))],     # fc2
        out_specs=x_spec,
        compiler_params=pltpu.CompilerParams(
            dimension_semantics=("parallel",),
            vmem_limit_bytes=vmem_limit),
    )(x, p['ln1_g'], p['ln1_b'],
      p['w_qkv'], p['b_qkv'], p['w_out'], p['b_out'],
      p['ln2_g'], p['ln2_b'],
      p['w_fc1'], p['b_fc1'], p['w_fc2'], p['b_fc2'])


def pallas_layernorm(x, gamma, beta):
    b, s, d = x.shape
    return pl.pallas_call(
        _layernorm_kernel,
        out_shape=jax.ShapeDtypeStruct((b, s, d), jnp.float32),
        grid=(b,),
        in_specs=[pl.BlockSpec((1, s, d), lambda i: (i, 0, 0)),
                  pl.BlockSpec((1, d), lambda i: (0, 0)),
                  pl.BlockSpec((1, d), lambda i: (0, 0))],
        out_specs=pl.BlockSpec((1, s, d), lambda i: (i, 0, 0)),
        compiler_params=pltpu.CompilerParams(dimension_semantics=("parallel",)),
    )(x, gamma, beta)


# ----------------------------------------------------------------------------
# Model forward (FrozenOpenCLIPEmbedder.encode_with_transformer on token ids)
# ----------------------------------------------------------------------------

def frozen_openclip_embedder_forward(tokens, params, *, heads, layer_idx):
    """x = tok_emb(tokens) + pos_emb; permute; resblocks[:-layer_idx]; permute; ln_final.

    The reference's permute(1,0,2) to [seq, batch, d] and back is layout-only
    (attention / LN / MLP are per-sequence, per-position), so activations stay
    batch-major [batch, seq, d] and both permutes fold away.
    """
    b, s = tokens.shape
    d = params['token_embedding'].shape[1]

    # token_embedding gather (XLA gather; avoids a one-row-per-step Pallas grid),
    # positional add fused in a batch-tiled Pallas kernel.
    emb = jnp.take(params['token_embedding'], tokens.astype(jnp.int32), axis=0)  # [b,s,d] bf16
    x = pallas_add_pos(emb, params['positional_embedding'])                      # [b,s,d] f32

    # transformer, stopping `layer_idx` blocks from the end ('penultimate' -> 1)
    n_run = len(params['blocks']) - layer_idx
    for blk in params['blocks'][:n_run]:
        x = pallas_transformer_block(x, blk, heads=heads)

    x = pallas_layernorm(x, params['ln_final_g'], params['ln_final_b'])
    return x                                                                      # [b, s, d]


# ----------------------------------------------------------------------------
# Deterministic parameter init (synthetic weights; no checkpoint loading)
# ----------------------------------------------------------------------------

def init_params(key, *, vocab, seq, d_model, heads, n_layers):
    std = 0.02
    d_mlp = 4 * d_model
    keys = jax.random.split(key, 2 + 5 * n_layers)
    ki = iter(keys)

    def nrm(shape, s=std):
        return (jax.random.normal(next(ki), shape, dtype=jnp.float32) * s
                ).astype(jnp.bfloat16)

    params = {
        'token_embedding': nrm((vocab, d_model)),
        'positional_embedding': nrm((seq, d_model), 0.01),
        'ln_final_g': jnp.ones((1, d_model), jnp.float32),
        'ln_final_b': jnp.zeros((1, d_model), jnp.float32),
        'blocks': [],
    }
    for _ in range(n_layers):
        blk = {
            'ln1_g': jnp.ones((1, d_model), jnp.float32),
            'ln1_b': jnp.zeros((1, d_model), jnp.float32),
            # fused QKV weight [D, 3D] (bf16), biases f32
            'w_qkv': nrm((d_model, 3 * d_model)),
            'b_qkv': jnp.zeros((1, 3 * d_model), jnp.float32),
            'w_out': nrm((d_model, d_model)),
            'b_out': jnp.zeros((1, d_model), jnp.float32),
            'ln2_g': jnp.ones((1, d_model), jnp.float32),
            'ln2_b': jnp.zeros((1, d_model), jnp.float32),
            'w_fc1': nrm((d_model, d_mlp)),
            'b_fc1': jnp.zeros((1, d_mlp), jnp.float32),
            'w_fc2': nrm((d_mlp, d_model)),
            'b_fc2': jnp.zeros((1, d_model), jnp.float32),
        }
        params['blocks'].append(blk)
    return params


# ----------------------------------------------------------------------------

if __name__ == "__main__":
    # Small shapes consistent with the module's forward:
    #   batch=2, max_length(seq)=8, d_model=32, heads=4, 3 transformer blocks,
    #   layer='penultimate' -> layer_idx=1 -> run 2 blocks, then ln_final.
    B, S, D, H, L, V = 2, 8, 32, 4, 3, 64
    LAYER_IDX = 1  # 'penultimate'

    key = jax.random.PRNGKey(0)
    kp, kt = jax.random.split(key)
    params = init_params(kp, vocab=V, seq=S, d_model=D, heads=H, n_layers=L)
    tokens = jax.random.randint(kt, (B, S), 0, V, dtype=jnp.int32)

    z = frozen_openclip_embedder_forward(tokens, params, heads=H, layer_idx=LAYER_IDX)
    z = jax.block_until_ready(z)

    assert z.shape == (B, S, D), z.shape
    assert bool(jnp.all(jnp.isfinite(z)))
    print("KERNEL_OK")
</pallas_src>

<mosaic_0001>
module attributes {stable_mosaic.version = 11 : i64} {
  func.func @_addpos_kernel(%arg0: i32, %arg1: memref<1x8x32xbf16, #tpu.memory_space<vmem>>, %arg2: memref<8x32xbf16, #tpu.memory_space<vmem>>, %arg3: memref<1x8x32xf32, #tpu.memory_space<vmem>>) attributes {dimension_semantics = [#tpu.dimension_semantics<parallel>], iteration_bounds = array<i64: 2>, scalar_prefetch = 0 : i64, scratch_operands = 0 : i64, tpu.core_type = #tpu.core_type<tc>, window_params = [{transform_indices = @transform_0, window_bounds = array<i64: 1, 8, 32>}, {pipeline_mode = #tpu.pipeline_mode<synchronous>, transform_indices = @transform_1, window_bounds = array<i64: 8, 32>}, {transform_indices = @transform_2, window_bounds = array<i64: 1, 8, 32>}]} {
    %c0 = arith.constant 0 : index
    %c0_0 = arith.constant 0 : index
    %c0_1 = arith.constant 0 : index
    %0 = vector.load %arg1[%c0, %c0_0, %c0_1] : memref<1x8x32xbf16, #tpu.memory_space<vmem>>, vector<1x8x32xbf16>
    %1 = vector.shape_cast %0 : vector<1x8x32xbf16> to vector<8x32xbf16>
    %2 = arith.extf %1 : vector<8x32xbf16> to vector<8x32xf32>
    %c0_2 = arith.constant 0 : index
    %c0_3 = arith.constant 0 : index
    %3 = vector.load %arg2[%c0_2, %c0_3] : memref<8x32xbf16, #tpu.memory_space<vmem>>, vector<8x32xbf16>
    %4 = arith.extf %3 : vector<8x32xbf16> to vector<8x32xf32>
    %5 = arith.addf %2, %4 : vector<8x32xf32>
    %c0_4 = arith.constant 0 : index
    %c0_5 = arith.constant 0 : index
    %c0_6 = arith.constant 0 : index
    %6 = vector.load %arg3[%c0_4, %c0_5, %c0_6] : memref<1x8x32xf32, #tpu.memory_space<vmem>>, vector<1x8x32xf32>
    %7 = vector.shape_cast %6 : vector<1x8x32xf32> to vector<8x32xf32>
    %8 = vector.shape_cast %5 : vector<8x32xf32> to vector<1x8x32xf32>
    tpu.vector_store %arg3[%c0_4, %c0_5, %c0_6], %8 {strides = array<i32>} : memref<1x8x32xf32, #tpu.memory_space<vmem>>, vector<1x8x32xf32>,
    return
  }
  func.func @transform_0(%arg0: i32) -> (i32, i32, i32) {
    %c0_i32 = arith.constant 0 : i32
    %c0_i32_0 = arith.constant 0 : i32
    %c0_i32_1 = arith.constant 0 : i32
    return %arg0, %c0_i32, %c0_i32_0 : i32, i32, i32
  }
  func.func @transform_1(%arg0: i32) -> (i32, i32) {
    %c0_i32 = arith.constant 0 : i32
    %c0_i32_0 = arith.constant 0 : i32
    %c0_i32_1 = arith.constant 0 : i32
    return %c0_i32, %c0_i32_0 : i32, i32
  }
  func.func @transform_2(%arg0: i32) -> (i32, i32, i32) {
    %c0_i32 = arith.constant 0 : i32
    %c0_i32_0 = arith.constant 0 : i32
    %c0_i32_1 = arith.constant 0 : i32
    return %arg0, %c0_i32, %c0_i32_0 : i32, i32, i32
  }
}

</mosaic_0001>

<bundles_post_ra>
// kernel: tpu_custom_call.1
= control target key start
LH: loop header
LB: loop body
LE: loop exit
PB: predicated region body
PF: predicated region fallthrough
CT: control target
= control target key end

     0   :  { %7 = vsyncpa [#allocation3], 0  ;;  %s637_s0 = inlined_call_operand.hbm [shape: bf16[2,8,32], index: 0, kind: input, shape index: {}]   ;;  %s638_s1 = inlined_call_operand.hbm [shape: bf16[8,32], index: 1, kind: input, shape index: {}]   ;;  %s639_s2 = inlined_call_operand.hbm [shape: f32[2,8,32], index: 2, kind: output, shape index: {}]  }
   0x1   :  { %9 = vsyncpa [#allocation3 + $0x1], 0 }
   0x2   :  { %10 = vsyncpa [#allocation6], 0 }
   0x3   :  { %11 = vsyncpa [#allocation4], 0 }
   0x4   :  { %13 = vsyncpa [#allocation4 + $0x1], 0  ;;  %s498_s9 = smov 0   ;;  %s500_s10 = smov 0  }
   0x5   :  { %s502_s11 = smov 0   ;;  %s504_s12 = smov 0  }
   0x6 LB: > { %s519_s13 = sadd.s32 4294967295, %s480_s12   ;;  %s279_s14 = sadd.s32 4294967294, %s480_s12   ;;  %s480_s12 = sphi %s504_s12, %s649_s12   ;;  %s476_s11 = sphi %s502_s11, %s648_s11   ;;  %s472_s10 = sphi %s500_s10, %s647_s10   ;;  %s468_s9 = sphi %s498_s9, %s646_s9  }
   0x7   : > { %p39_p0 = scmp.ne.s32.totalorder %s472_s10, %s468_s9  ;;  %p40_p1 = scmp.eq.s32.totalorder %s519_s13, 0 }
   0x8   : > { %p84_p2 = scmp.eq.s32.totalorder %s519_s13, 1  ;;  %p90_p3 = scmp.eq.s32.totalorder %s279_s14, 1 }
   0x9   : > { %p528_p4 = por %p40_p1, %p39_p0  ;;  %p280_p5 = scmp.ge.s32.totalorder %s480_s12, 1 }
   0xa   : > { %p533_p6 = por %p90_p3, %p39_p0  ;;  %p97_p7 = scmp.lt.s32.totalorder %s480_s12, 3 }
   0xb   : > { %s109_s19 = sshll.u32 %s638_s1, 4  ;;  %s482_s21 = smov [#allocation5]   ;;  %s110_s19 = int_to_ptr.hbm [resolvable:$true] %s109_s19 }
   0xc   : > { %p541_p8 = pnand %p280_p5, %p97_p7  ;;  %s111_s22 = sshll.u32 %s482_s21, 4  ;;  %s112_s22 = int_to_ptr.vmem [resolvable:$true] %s111_s22 }
   0xd   : > { %s551_s23 = sadd.s32 1, %s480_s12   ;;  %s26_s24 = sadd.s32 1, %s476_s11 }
   0xe   : > { %p301_p10 = pneg %p541_p8  ;;  %s23_s25 = ssub.s32 %s480_s12, %s551_s23 }
   0xf   : > { %p24_p12 = scmp.eq.s32.totalorder %s23_s25, 0  ;;  %p33_p13 = scmp.ne.s32.totalorder %s476_s11, %s472_s10 }
  0x10   : > { %p302_p11 = pnand %p301_p10, %p40_p1  ;;  %p34_p0 = scmp.eq.s32.totalorder %s480_s12, 0 }
  0x11   : > { %s560_s26 = scalar_select %p24_p12, %s476_s11, %s26_s24  }
  0x12   : > { %304 = dma.hbm_to_vmem [thread:$0]  (!%p302_p11), %s110_s19, 64, %s112_s22, [#allocation6]  }
  0x13   : > { %p564_p3 = por %p84_p2, %p33_p13  ;;  %p314_p5 = scmp.lt.s32.totalorder %s480_s12, 2 }
  0x14   : > { %s122_s28 = sand.u32 1, %s476_s11   ;;  %s284_s29 = sshll.u32 %s480_s12, 2 }
  0x15   : > { %p35_p7 = por %p34_p0, %p33_p13  ;;  %s283_s30 = sshll.u32 %s122_s28, 2 }
  0x16   : > { %s130_s5 = scalar_lea.hbm %s637_s0, %s284_s29  ;;  %s126_s7 = scalar_lea.vmem [#allocation2], %s283_s30 }
  0x17   : > { %s132_s6 = sshll.u32 %s130_s5, 4  ;;  %s134_s8 = sshll.u32 %s126_s7, 4  ;;  %s133_s6 = int_to_ptr.hbm [resolvable:$true] %s132_s6  ;;  %s135_s8 = int_to_ptr.vmem [resolvable:$true] %s134_s8 }
  0x18   : > { %p574_p10 = pnand %p314_p5, %p35_p7  ;;  %s123_s17 = scalar_lea.sflag [#allocation3], %s122_s28 }
  0x19   : > { %s380_s18 = sshra.s32 %s133_s6, 4  ;;  %s387_s24 = scalar_lea.hbm %s637_s0, 8  ;;  %s381_s18 = int_to_ptr.hbm [resolvable:$true] %s380_s18 }
  0x1a   : > { %s382_s19 = scalar_lea.hbm %s381_s18, 4  ;;  %p384_p11 = pneg %p574_p10 }
  0x1b   : > { %p383_p2 = scmp.ne.s32.totalorder %s381_s18, %s382_s19  ;;  %p388_p0 = scmp.lt.s32.totalorder %s381_s18, %s637_s0 }
  0x1c   : > { %p389_p5 = scmp.lt.s32.totalorder %s387_s24, %s382_s19 }
  0x1d   : > { %p385_p12 = pnand %p384_p11, %p383_p2 }
  0x1e   : > { %p390_p7 = por %p389_p5, %p388_p0 }
  0x1f   : > { %p386_p13 = pneg %p385_p12 }
  0x21   : > { %p391_p9 = pnand %p390_p7, %p386_p13 }
  0x23   : > { %394 = shalt.err (!%p391_p9)
}
  0x24   : > { %308 = dma.hbm_to_vmem [thread:$0]  (!%p574_p10), %s133_s6, 64, %s135_s8, %s123_s17  }
  0x25   : > { %143 = sbr.rel (%p541_p8) target bundleno = 60 (0x3c), region = 28  ;;  %s591_s28 = sand.u32 (!%p541_p8), 1, %s472_s10  }
  0x26   : > { %s286_s30 = sshll.u32 (!%p541_p8), %s591_s28, 2  ;;  %s146_s3 = scalar_lea.sflag (!%p541_p8), [#allocation3], %s591_s28 }
  0x27   : > { %s149_s4 = scalar_lea.vmem (!%p541_p8), [#allocation2], %s286_s30 }
  0x2a   : > { %455 = dma.done.wait (%p528_p4), %s146_s3, 64  }
  0x2b   : > { %457 = vsyncadd (%p528_p4), %s146_s3, 4294967232 }
  0x2c   : > { %459 = dma.done.wait (%p40_p1), [#allocation6], 64  }
  0x2d   : > { %461 = vsyncadd (%p40_p1), [#allocation6], 4294967232  ;;  %s288_s20 = sshll.u32 %s591_s28, 3  ;;  %s290_s5 = sshll.u32 %s519_s13, 3  ;;  %v176_v0 = vld [vmem:[%s149_s4] sm:$0xf] }
  0x2e   : > { %s194_s8 = scalar_lea.hbm %s639_s2, %s290_s5  ;;  %v178_v1 = vld [vmem:[#allocation5] sm:$0xf]  ;;  %s175_s15 = scalar_lea.vmem [#allocation7], %s288_s20  ;;  %v177_v2 = vunpack.c.l.bf16 %v176_v0  ;;  %vm181_vm0 = vcmask 261120  }
  0x2f   : > { %s196_s14 = sshll.u32 %s175_s15, 4  ;;  %s198_s17 = sshll.u32 %s194_s8, 4  ;;  %v179_v3 = vunpack.c.l.bf16 %v178_v1  ;;  %s197_s14 = int_to_ptr.vmem [resolvable:$true] %s196_s14  ;;  %s199_s17 = int_to_ptr.hbm [resolvable:$true] %s198_s17 }
  0x30   : > { %s184_s18 = scalar_lea.sflag [#allocation4], %s591_s28  ;;  %s424_s19 = sshra.s32 %s199_s17, 4  ;;  %s425_s19 = int_to_ptr.hbm [resolvable:$true] %s424_s19 }
  0x31   : > { %v180_v4 = vadd.f32 %v179_v3, %v177_v2  ;;  %s426_s13 = scalar_lea.hbm %s425_s19, 8  ;;  %s430_s24 = scalar_lea.hbm %s639_s2, 16 }
  0x32   : > { %p427_p1 = scmp.ne.s32.totalorder %s425_s19, %s426_s13  ;;  %p431_p9 = scmp.lt.s32.totalorder %s425_s19, %s639_s2 }
  0x33   : > { %182 = vst.msk [vmem:[%s175_s15] sm:$0xff] %vm181_vm0, %v180_v4  ;;  %p432_p10 = scmp.lt.s32.totalorder %s430_s24, %s426_s13 }
  0x34   : > { %p428_p4 = pnand %p427_p1, %p564_p3 }
  0x35   : > { %p433_p2 = por %p432_p10, %p431_p9 }
  0x36   : > { %p429_p8 = pneg %p428_p4 }
  0x38   : > { %p434_p11 = pnand %p433_p2, %p429_p8 }
  0x3a   : > { %437 = shalt.err (!%p434_p11)
}
  0x3b   : > { %299 = dma.vmem_to_hbm [thread:$0]  (%p564_p3), %s197_s14, 128, %s199_s17, %s184_s18  }
  0x3c PF: > { %s210_s28 = sand.u32 1, %s468_s9   ;;  %p645_p12 = scmp.ge.s32.totalorder %s480_s12, 2 }
  0x3d   : > { %s211_s30 = scalar_lea.sflag [#allocation4], %s210_s28 }
  0x3e   : > { %p310_p13 = pnand %p645_p12, %p533_p6 }
  0x40   : > { %p311_p0 = pneg %p310_p13 }
  0x42   : > { %463 = dma.done.wait (%p311_p0), %s211_s30, 128  }
  0x43   : > { %465 = vsyncadd (%p311_p0), %s211_s30, 4294967168  ;;  %p16_p5 = scmp.ge.s32.totalorder %s551_s23, 4   ;;  %s646_s9 = smov %s472_s10 }
  0x44   : > { %s647_s10 = smov %s476_s11  ;;  %s648_s11 = smov %s560_s26 }
  0x45   : > { %s649_s12 = smov %s551_s23  ;;  %18 = sbr.rel (!%p16_p5) target bundleno = 6 (0x6), region = 77 }
  0x4a   :  { %217 = vsyncpa [#allocation3], 1 }
  0x4b   :  { %219 = vsyncpa [#allocation3 + $0x1], 1 }
  0x4c   :  { %220 = vsyncpa [#allocation6], 1 }
  0x4d   :  { %221 = vsyncpa [#allocation4], 1 }
  0x4e   :  { %223 = vsyncpa [#allocation4 + $0x1], 1 }

</bundles_post_ra>
